<compile_context>
chip_gen: v7x
topology: tpu7x:2x2x1
jax: 0.10.0
libtpu: 0.0.40
codegen_flags: <defaults>
</compile_context>

<pallas_src>
import functools

import jax
import jax.numpy as jnp
from jax.experimental import pallas as pl
from jax.experimental.pallas import tpu as pltpu


def _dice_kernel(remap_ref, tmin_ref, logits_ref, labels_ref, out_ref,
                 acc_i, acc_t, *, hw, tile_cols, tiles_per_split, needs_mask,
                 ignore_index):
    k = pl.program_id(2)

    @pl.when(k == 0)
    def _init():
        acc_i[...] = jnp.zeros_like(acc_i)
        acc_t[...] = jnp.zeros_like(acc_t)

    x = logits_ref[...].astype(jnp.float32)            # (C, tile_cols)
    lbl = labels_ref[...]                              # (1, tile_cols) int32

    # Fused ignore_index remap: lbl == ignore -> tmin when the wrapper-side
    # scalar flag says so.  Pure VPU compare/select; no HBM rewrite of target.
    do_remap = remap_ref[0] != 0
    lbl = jnp.where(jnp.logical_and(do_remap, lbl == ignore_index),
                    tmin_ref[0], lbl)

    if needs_mask:
        s = pl.program_id(1)
        j = s * tiles_per_split + k                    # unclamped tile index
        col = (jax.lax.broadcasted_iota(jnp.int32, (1, tile_cols), 1)
               + j * tile_cols)
        valid = col < hw                               # (1, tile_cols) bool
        x = jnp.where(valid, x, 0.0)                   # zero BEFORE exp
        valid_f = valid.astype(jnp.float32)

    # Numerically stable softmax over the class (sublane) axis.
    m = jnp.max(x, axis=0, keepdims=True)              # (1, tile_cols)
    e = jnp.exp(x - m)                                 # (C, tile_cols)
    sum_e = jnp.sum(e, axis=0, keepdims=True)          # (1, tile_cols)

    cls = jax.lax.broadcasted_iota(jnp.int32, x.shape, 0)
    one_hot = (cls == lbl).astype(jnp.float32)         # (C, tile_cols)

    tgt_e = jnp.sum(e * one_hot, axis=0, keepdims=True)
    inter_col = tgt_e / sum_e                          # target-class softmax prob
    t_col = jnp.sum(one_hot, axis=0, keepdims=True)    # 1 iff label in [0, C)

    if needs_mask:
        inter_col = inter_col * valid_f
        t_col = t_col * valid_f

    # Lane-wide VMEM vector accumulators; cross-lane reduce only in finalize.
    acc_i[...] += inter_col
    acc_t[...] += t_col

    @pl.when(k == pl.num_programs(2) - 1)
    def _finalize():
        inter = jnp.sum(acc_i[...])
        s_tgt = jnp.sum(acc_t[...])
        lane = jax.lax.broadcasted_iota(jnp.int32, (1, 128), 1)
        out_ref[...] = (jnp.where(lane == 0, inter, 0.0)
                        + jnp.where(lane == 1, s_tgt, 0.0))


def _vmem_capacity_bytes():
    try:
        return int(pltpu.get_tpu_info().vmem_capacity_bytes)
    except Exception:
        return 64 << 20        # conservative (v7x-sized) fallback


def dice_loss(output, target, *, smooth=1.0, ignore_index=255):
    """Pallas TPU implementation of DiceLoss.forward.

    output: (N, C, H, W) float logits
    target: (N, H, W)    integer labels
    """
    N, C, H, W = output.shape
    HW = H * W
    target = target.astype(jnp.int32)

    # --- ignore_index remap decision: scalars only (one fused reduction pass);
    # the remap itself runs inside the kernel via scalar prefetch.
    tmin = jnp.min(target)
    tmax = jnp.max(target)
    in_range = jnp.logical_and(ignore_index >= tmin, ignore_index < tmax)
    has_ignore = jnp.any(target == ignore_index)
    do_remap = jnp.logical_and(jnp.logical_not(in_range), has_ignore)
    remap_flag = do_remap.astype(jnp.int32).reshape(1)
    tmin_arr = tmin.astype(jnp.int32).reshape(1)

    # Free reshapes: NCHW logits -> (N, C, HW); labels -> (N, 1, HW).
    logits3d = output.reshape(N, C, HW)
    labels3d = target.reshape(N, 1, HW)

    # --- VMEM-aware lane-dense tile over the flattened spatial dim.
    vmem_cap = _vmem_capacity_bytes()
    vmem_limit = (64 << 20) if vmem_cap >= (128 << 20) else (24 << 20)
    # bytes per spatial column: double-buffered logits+labels + 2 accumulators
    bytes_per_col = (2 * (C + 1) + 2) * 4
    max_by_vmem = (vmem_limit // 2) // bytes_per_col
    max_by_block = (4 << 20) // (4 * C)        # keep the logits block <= 4 MiB
    max_tile_cols = max(512, (min(max_by_vmem, max_by_block) // 128) * 128)

    if HW <= max_tile_cols:
        tile_cols = HW                  # full extent; no partial tile, no mask
        num_tiles = 1
    else:
        tile_cols = max_tile_cols       # multiple of 128 by construction
        num_tiles = pl.cdiv(HW, tile_cols)

    # Second "parallel" axis: split column tiles across TensorCores (megacore
    # balance on v7x even for N == 1); harmless on single-core chips.
    n_splits = 2 if num_tiles >= 2 else 1
    tiles_per_split = pl.cdiv(num_tiles, n_splits)
    padded_tiles = n_splits * tiles_per_split
    needs_mask = (padded_tiles * tile_cols) > HW

    def col_block(n, s, k, remap, tmn):
        j = s * tiles_per_split + k
        if padded_tiles > num_tiles:
            j = jnp.minimum(j, num_tiles - 1)   # clamp fully-padded tiles (masked)
        return (n, 0, j)

    def out_block(n, s, k, remap, tmn):
        return (n * n_splits + s, 0, 0)

    kernel = functools.partial(
        _dice_kernel, hw=HW, tile_cols=tile_cols,
        tiles_per_split=tiles_per_split, needs_mask=needs_mask,
        ignore_index=int(ignore_index))

    partials = pl.pallas_call(
        kernel,
        out_shape=jax.ShapeDtypeStruct((N * n_splits, 1, 128), jnp.float32),
        grid_spec=pltpu.PrefetchScalarGridSpec(
            num_scalar_prefetch=2,
            grid=(N, n_splits, tiles_per_split),
            in_specs=[
                pl.BlockSpec((None, C, tile_cols), col_block),
                pl.BlockSpec((None, 1, tile_cols), col_block),
            ],
            out_specs=pl.BlockSpec((None, 1, 128), out_block),
            scratch_shapes=[
                pltpu.VMEM((1, tile_cols), jnp.float32),   # acc_i
                pltpu.VMEM((1, tile_cols), jnp.float32),   # acc_t
            ],
        ),
        compiler_params=pltpu.CompilerParams(
            dimension_semantics=("parallel", "parallel", "arbitrary"),
            vmem_limit_bytes=int(vmem_limit)),
    )(remap_flag, tmin_arr, logits3d, labels3d)

    sums = jnp.sum(partials.reshape(N * n_splits, 128), axis=0)
    inter = sums[0]
    s_tgt = sums[1]
    s_out = jnp.float32(N * HW)     # sum over softmax == number of pixels
    smooth = jnp.float32(smooth)
    return 1.0 - (2.0 * inter + smooth) / (s_out + s_tgt + smooth)


if __name__ == "__main__":
    key = jax.random.PRNGKey(0)
    k1, k2 = jax.random.split(key)

    N, C, H, W = 2, 4, 16, 16
    output = jax.random.normal(k1, (N, C, H, W), dtype=jnp.float32)
    target = jax.random.randint(k2, (N, H, W), 0, C, dtype=jnp.int32)

    loss = dice_loss(output, target, smooth=1.0, ignore_index=255)
    jax.block_until_ready(loss)

    # plain-JAX reference check
    p = jax.nn.softmax(output, axis=1)
    oh = jnp.transpose(jax.nn.one_hot(target, C, dtype=jnp.float32),
                       (0, 3, 1, 2))
    inter = jnp.sum(p * oh)
    ref = 1.0 - (2.0 * inter + 1.0) / (jnp.sum(p) + jnp.sum(oh) + 1.0)
    assert jnp.allclose(loss, ref, atol=1e-5), (loss, ref)

    print("KERNEL_OK")
</pallas_src>

<mosaic_0001>
module attributes {stable_mosaic.version = 11 : i64} {
  func.func @_dice_kernel(%arg0: i32, %arg1: i32, %arg2: i32, %arg3: memref<1xi32, #tpu.memory_space<smem>>, %arg4: memref<1xi32, #tpu.memory_space<smem>>, %arg5: memref<1x4x256xf32, #tpu.memory_space<vmem>>, %arg6: memref<1x1x256xi32, #tpu.memory_space<vmem>>, %arg7: memref<1x1x128xf32, #tpu.memory_space<vmem>>, %arg8: memref<1x256xf32, #tpu.memory_space<vmem>>, %arg9: memref<1x256xf32, #tpu.memory_space<vmem>>) attributes {dimension_semantics = [#tpu.dimension_semantics<parallel>, #tpu.dimension_semantics<parallel>, #tpu.dimension_semantics<arbitrary>], iteration_bounds = array<i64: 2, 1, 1>, scalar_prefetch = 2 : i64, scratch_operands = 2 : i64, tpu.core_type = #tpu.core_type<tc>, window_params = [{transform_indices = @transform_0, window_bounds = array<i64: 1, 4, 256>}, {transform_indices = @transform_1, window_bounds = array<i64: 1, 1, 256>}, {transform_indices = @transform_2, window_bounds = array<i64: 1, 1, 128>}]} {
    %c0_i32 = arith.constant 0 : i32
    %0 = arith.cmpi eq, %arg2, %c0_i32 : i32
    %1 = arith.extui %0 : i1 to i32
    %c0_i32_0 = arith.constant 0 : i32
    %2 = arith.cmpi ne, %1, %c0_i32_0 : i32
    scf.if %2 {
      %cst_22 = arith.constant 0.000000e+00 : f32
      %43 = vector.broadcast %cst_22 : f32 to vector<1x256xf32>
      %c0_23 = arith.constant 0 : index
      %c0_24 = arith.constant 0 : index
      %44 = vector.load %arg8[%c0_23, %c0_24] : memref<1x256xf32, #tpu.memory_space<vmem>>, vector<1x256xf32>
      tpu.vector_store %arg8[%c0_23, %c0_24], %43 {strides = array<i32>} : memref<1x256xf32, #tpu.memory_space<vmem>>, vector<1x256xf32>,
      %cst_25 = arith.constant 0.000000e+00 : f32
      %45 = vector.broadcast %cst_25 : f32 to vector<1x256xf32>
      %c0_26 = arith.constant 0 : index
      %c0_27 = arith.constant 0 : index
      %46 = vector.load %arg9[%c0_26, %c0_27] : memref<1x256xf32, #tpu.memory_space<vmem>>, vector<1x256xf32>
      tpu.vector_store %arg9[%c0_26, %c0_27], %45 {strides = array<i32>} : memref<1x256xf32, #tpu.memory_space<vmem>>, vector<1x256xf32>,
    } else {
    }
    %c0 = arith.constant 0 : index
    %c0_1 = arith.constant 0 : index
    %c0_2 = arith.constant 0 : index
    %3 = vector.load %arg5[%c0, %c0_1, %c0_2] : memref<1x4x256xf32, #tpu.memory_space<vmem>>, vector<1x4x256xf32>
    %4 = vector.shape_cast %3 : vector<1x4x256xf32> to vector<4x256xf32>
    %c0_3 = arith.constant 0 : index
    %c0_4 = arith.constant 0 : index
    %c0_5 = arith.constant 0 : index
    %5 = vector.load %arg6[%c0_3, %c0_4, %c0_5] : memref<1x1x256xi32, #tpu.memory_space<vmem>>, vector<1x1x256xi32>
    %6 = vector.shape_cast %5 : vector<1x1x256xi32> to vector<1x256xi32>
    %c0_6 = arith.constant 0 : index
    %7 = memref.load %arg3[%c0_6] : memref<1xi32, #tpu.memory_space<smem>>
    %c0_i32_7 = arith.constant 0 : i32
    %8 = arith.cmpi ne, %7, %c0_i32_7 : i32
    %c255_i32 = arith.constant 255 : i32
    %9 = vector.broadcast %c255_i32 : i32 to vector<1x256xi32>
    %10 = arith.cmpi eq, %6, %9 : vector<1x256xi32>
    %11 = vector.broadcast %8 : i1 to vector<1x256xi1>
    %12 = arith.andi %11, %10 : vector<1x256xi1>
    %c0_8 = arith.constant 0 : index
    %13 = memref.load %arg4[%c0_8] : memref<1xi32, #tpu.memory_space<smem>>
    %14 = vector.broadcast %13 : i32 to vector<1x256xi32>
    %15 = arith.select %12, %14, %6 : vector<1x256xi1>, vector<1x256xi32>
    %cst = arith.constant dense<0xFF800000> : vector<256xf32>
    %16 = vector.multi_reduction <maximumf>, %4, %cst [0] : vector<4x256xf32> to vector<256xf32>
    %17 = vector.shape_cast %16 : vector<256xf32> to vector<1x256xf32>
    %18 = vector.broadcast %17 : vector<1x256xf32> to vector<4x256xf32>
    %19 = arith.subf %4, %18 : vector<4x256xf32>
    %20 = math.exp %19 : vector<4x256xf32>
    %cst_9 = arith.constant dense<0.000000e+00> : vector<256xf32>
    %21 = vector.multi_reduction <add>, %20, %cst_9 [0] : vector<4x256xf32> to vector<256xf32>
    %22 = vector.shape_cast %21 : vector<256xf32> to vector<1x256xf32>
    %23 = tpu.iota {dimensions = array<i32: 0>} : vector<4x256xi32>
    %24 = vector.broadcast %15 : vector<1x256xi32> to vector<4x256xi32>
    %25 = arith.cmpi eq, %23, %24 : vector<4x256xi32>
    %26 = arith.extui %25 : vector<4x256xi1> to vector<4x256xi32>
    %27 = arith.sitofp %26 : vector<4x256xi32> to vector<4x256xf32>
    %28 = arith.mulf %20, %27 : vector<4x256xf32>
    %cst_10 = arith.constant dense<0.000000e+00> : vector<256xf32>
    %29 = vector.multi_reduction <add>, %28, %cst_10 [0] : vector<4x256xf32> to vector<256xf32>
    %30 = vector.shape_cast %29 : vector<256xf32> to vector<1x256xf32>
    %31 = arith.divf %30, %22 : vector<1x256xf32>
    %cst_11 = arith.constant dense<0.000000e+00> : vector<256xf32>
    %32 = vector.multi_reduction <add>, %27, %cst_11 [0] : vector<4x256xf32> to vector<256xf32>
    %33 = vector.shape_cast %32 : vector<256xf32> to vector<1x256xf32>
    %c0_12 = arith.constant 0 : index
    %c0_13 = arith.constant 0 : index
    %34 = vector.load %arg8[%c0_12, %c0_13] : memref<1x256xf32, #tpu.memory_space<vmem>>, vector<1x256xf32>
    %35 = arith.addf %34, %31 : vector<1x256xf32>
    %c0_14 = arith.constant 0 : index
    %c0_15 = arith.constant 0 : index
    %36 = vector.load %arg8[%c0_14, %c0_15] : memref<1x256xf32, #tpu.memory_space<vmem>>, vector<1x256xf32>
    tpu.vector_store %arg8[%c0_14, %c0_15], %35 {strides = array<i32>} : memref<1x256xf32, #tpu.memory_space<vmem>>, vector<1x256xf32>,
    %c0_16 = arith.constant 0 : index
    %c0_17 = arith.constant 0 : index
    %37 = vector.load %arg9[%c0_16, %c0_17] : memref<1x256xf32, #tpu.memory_space<vmem>>, vector<1x256xf32>
    %38 = arith.addf %37, %33 : vector<1x256xf32>
    %c0_18 = arith.constant 0 : index
    %c0_19 = arith.constant 0 : index
    %39 = vector.load %arg9[%c0_18, %c0_19] : memref<1x256xf32, #tpu.memory_space<vmem>>, vector<1x256xf32>
    tpu.vector_store %arg9[%c0_18, %c0_19], %38 {strides = array<i32>} : memref<1x256xf32, #tpu.memory_space<vmem>>, vector<1x256xf32>,
    %c0_i32_20 = arith.constant 0 : i32
    %40 = arith.cmpi eq, %arg2, %c0_i32_20 : i32
    %41 = arith.extui %40 : i1 to i32
    %c0_i32_21 = arith.constant 0 : i32
    %42 = arith.cmpi ne, %41, %c0_i32_21 : i32
    scf.if %42 {
      %c0_22 = arith.constant 0 : index
      %c0_23 = arith.constant 0 : index
      %43 = vector.load %arg8[%c0_22, %c0_23] : memref<1x256xf32, #tpu.memory_space<vmem>>, vector<1x256xf32>
      %44 = vector.shape_cast %43 : vector<1x256xf32> to vector<1x1x256xf32>
      %cst_24 = arith.constant dense<0.000000e+00> : vector<1xf32>
      %45 = vector.multi_reduction <add>, %44, %cst_24 [1, 2] : vector<1x1x256xf32> to vector<1xf32>
      %46 = vector.shape_cast %45 : vector<1xf32> to vector<1x1x1xf32>
      %47 = vector.extract %46[0, 0, 0] : f32 from vector<1x1x1xf32>
      %c0_25 = arith.constant 0 : index
      %c0_26 = arith.constant 0 : index
      %48 = vector.load %arg9[%c0_25, %c0_26] : memref<1x256xf32, #tpu.memory_space<vmem>>, vector<1x256xf32>
      %49 = vector.shape_cast %48 : vector<1x256xf32> to vector<1x1x256xf32>
      %cst_27 = arith.constant dense<0.000000e+00> : vector<1xf32>
      %50 = vector.multi_reduction <add>, %49, %cst_27 [1, 2] : vector<1x1x256xf32> to vector<1xf32>
      %51 = vector.shape_cast %50 : vector<1xf32> to vector<1x1x1xf32>
      %52 = vector.extract %51[0, 0, 0] : f32 from vector<1x1x1xf32>
      %53 = tpu.iota {dimensions = array<i32: 1>} : vector<1x128xi32>
      %c0_i32_28 = arith.constant 0 : i32
      %54 = vector.broadcast %c0_i32_28 : i32 to vector<1x128xi32>
      %55 = arith.cmpi eq, %53, %54 : vector<1x128xi32>
      %cst_29 = arith.constant 0.000000e+00 : f32
      %56 = vector.broadcast %47 : f32 to vector<1x128xf32>
      %57 = vector.broadcast %cst_29 : f32 to vector<1x128xf32>
      %58 = arith.select %55, %56, %57 : vector<1x128xi1>, vector<1x128xf32>
      %c1_i32 = arith.constant 1 : i32
      %59 = vector.broadcast %c1_i32 : i32 to vector<1x128xi32>
      %60 = arith.cmpi eq, %53, %59 : vector<1x128xi32>
      %cst_30 = arith.constant 0.000000e+00 : f32
      %61 = vector.broadcast %52 : f32 to vector<1x128xf32>
      %62 = vector.broadcast %cst_30 : f32 to vector<1x128xf32>
      %63 = arith.select %60, %61, %62 : vector<1x128xi1>, vector<1x128xf32>
      %64 = arith.addf %58, %63 : vector<1x128xf32>
      %c0_31 = arith.constant 0 : index
      %c0_32 = arith.constant 0 : index
      %c0_33 = arith.constant 0 : index
      %65 = vector.load %arg7[%c0_31, %c0_32, %c0_33] : memref<1x1x128xf32, #tpu.memory_space<vmem>>, vector<1x1x128xf32>
      %66 = vector.shape_cast %65 : vector<1x1x128xf32> to vector<1x128xf32>
      %67 = vector.shape_cast %64 : vector<1x128xf32> to vector<1x1x128xf32>
      tpu.vector_store %arg7[%c0_31, %c0_32, %c0_33], %67 {strides = array<i32>} : memref<1x1x128xf32, #tpu.memory_space<vmem>>, vector<1x1x128xf32>,
    } else {
    }
    return
  }
  func.func @transform_0(%arg0: i32, %arg1: i32, %arg2: i32, %arg3: memref<1xi32, #tpu.memory_space<smem>>, %arg4: memref<1xi32, #tpu.memory_space<smem>>) -> (i32, i32, i32) {
    %c1_i32 = arith.constant 1 : i32
    %0 = arith.muli %arg1, %c1_i32 : i32
    %1 = arith.addi %0, %arg2 : i32
    %c0_i32 = arith.constant 0 : i32
    %c0_i32_0 = arith.constant 0 : i32
    return %arg0, %c0_i32, %1 : i32, i32, i32
  }
  func.func @transform_1(%arg0: i32, %arg1: i32, %arg2: i32, %arg3: memref<1xi32, #tpu.memory_space<smem>>, %arg4: memref<1xi32, #tpu.memory_space<smem>>) -> (i32, i32, i32) {
    %c1_i32 = arith.constant 1 : i32
    %0 = arith.muli %arg1, %c1_i32 : i32
    %1 = arith.addi %0, %arg2 : i32
    %c0_i32 = arith.constant 0 : i32
    %c0_i32_0 = arith.constant 0 : i32
    return %arg0, %c0_i32, %1 : i32, i32, i32
  }
  func.func @transform_2(%arg0: i32, %arg1: i32, %arg2: i32, %arg3: memref<1xi32, #tpu.memory_space<smem>>, %arg4: memref<1xi32, #tpu.memory_space<smem>>) -> (i32, i32, i32) {
    %c1_i32 = arith.constant 1 : i32
    %0 = arith.muli %arg0, %c1_i32 : i32
    %1 = arith.addi %0, %arg1 : i32
    %c0_i32 = arith.constant 0 : i32
    %c0_i32_0 = arith.constant 0 : i32
    %c0_i32_1 = arith.constant 0 : i32
    return %1, %c0_i32, %c0_i32_0 : i32, i32, i32
  }
}

</mosaic_0001>

<bundles_post_ra>
// kernel: tpu_custom_call.1
= control target key start
LH: loop header
LB: loop body
LE: loop exit
PB: predicated region body
PF: predicated region fallthrough
CT: control target
= control target key end

     0   :  { %s1024_s0 = inlined_call_operand.<no memory space> [shape: s32[1], index: 0, kind: input, shape index: {}]   ;;  %s1025_s1 = inlined_call_operand.<no memory space> [shape: s32[1], index: 1, kind: input, shape index: {}]   ;;  %s1026_s2 = inlined_call_operand.hbm [shape: f32[2,4,256], index: 2, kind: input, shape index: {}]   ;;  %s1027_s3 = inlined_call_operand.vmem [shape: s32[2,1,256], index: 3, kind: input, shape index: {}]   ;;  %s1028_s4 = inlined_call_operand.hbm [shape: f32[2,1,128], index: 4, kind: output, shape index: {}]  }
   0x1   :  { %9 = sst [smem:[#allocation5]] %s1024_s0 }
   0x2   :  { %10 = sst [smem:[#allocation6]] %s1025_s1 }
   0x3   :  { %11 = vsyncpa [#allocation8], 0 }
   0x4   :  { %13 = vsyncpa [#allocation8 + $0x1], 0 }
   0x5   :  { %14 = vsyncpa [#allocation9], 0 }
   0x6   :  { %16 = vsyncpa [#allocation9 + $0x1], 0  ;;  %s813_s19 = smov 0   ;;  %s815_s20 = smov 0  }
   0x7   :  { %s817_s21 = smov 0   ;;  %s819_s22 = smov 0  }
   0x8   :  { %s821_s23 = smov 0   ;;  %s823_s24 = smov 0  }
   0x9 LB: > { %s573_s0 = sadd.s32 4294967295, %s776_s24   ;;  %s574_s1 = sadd.s32 4294967294, %s776_s24   ;;  %s776_s24 = sphi %s823_s24, %s22_s24   ;;  %s772_s23 = sphi %s821_s23, %s1046_s23   ;;  %s768_s22 = sphi %s819_s22, %s1045_s22   ;;  %s764_s21 = sphi %s817_s21, %s1044_s21   ;;  %s760_s20 = sphi %s815_s20, %s1043_s20   ;;  %s756_s19 = sphi %s813_s19, %s1042_s19  }
   0xa   : > { %s41_s25 = sadd.s32 1, %s772_s23  ;;  %s52_s26 = sadd.s32 1, %s764_s21 }
   0xb   : > { %p43_p0 = scmp.ge.s32.totalorder %s41_s25, 2  ;;  %p59_p1 = scmp.ne.s32.totalorder %s764_s21, %s760_s20 }
   0xc   : > { %p60_p2 = scmp.eq.s32.totalorder %s776_s24, 0  ;;  %p65_p3 = scmp.ne.s32.totalorder %s760_s20, %s756_s19 }
   0xd   : > { %s1048_s25 = smov (%p43_p0, %s41_s25), 0  ;;  %p66_p5 = scmp.eq.s32.totalorder %s573_s0, 0 }
   0xe   : > { %p854_p4 = por %p60_p2, %p59_p1  ;;  %s47_s28 = ssub.s32 %s772_s23, %s1048_s25 }
   0xf   : > { %p121_p6 = scmp.eq.s32.totalorder %s573_s0, 1  ;;  %p50_p7 = scmp.eq.s32.totalorder %s47_s28, 0 }
  0x10   : > { %p860_p8 = por %p66_p5, %p65_p3  ;;  %p127_p10 = scmp.eq.s32.totalorder %s574_s1, 1 }
  0x11   : > { %p864_p9 = por %p121_p6, %p59_p1  ;;  %p605_p13 = scmp.lt.s32.totalorder %s776_s24, 2 }
  0x12   : > { %s869_s5 = scalar_select %p50_p7, %s764_s21, %s52_s26  }
  0x13   : > { %s1032_s30 = scalar_select %p864_p9, 1, 0 }
  0x14   : > { %p871_p11 = por %p127_p10, %p65_p3  ;;  %s147_s7 = sand.u32 1, %s764_s21  }
  0x15   : > { %s577_s8 = sshll.u32 %s147_s7, 3  ;;  %s588_s9 = sshll.u32 %s772_s23, 7 }
  0x16   : > { %s1033_s6 = scalar_select %p871_p11, 1, 0 }
  0x17   : > { %s882_s12 = scalar_lea.hbm %s1026_s2, %s588_s9  ;;  %s151_s13 = scalar_lea.vmem [#allocation7], %s577_s8 }
  0x18   : > { %s162_s14 = sshll.u32 %s151_s13, 4  ;;  %p888_p0 = pnand %p605_p13, %p854_p4  ;;  %s884_s14 = int_to_ptr.vmem [resolvable:$true] %s162_s14 }
  0x19   : > { %s148_s16 = scalar_lea.sflag [#allocation8], %s147_s7  ;;  %s664_s17 = scalar_lea.hbm %s882_s12, 128 }
  0x1a   : > { %p665_p3 = scmp.ne.s32.totalorder %s882_s12, %s664_s17  ;;  %p666_p5 = pneg %p888_p0 }
  0x1b   : > { %s669_s1 = scalar_lea.hbm %s1026_s2, 256  ;;  %p670_p4 = scmp.lt.u32.totalorder %s882_s12, %s1026_s2 }
  0x1c   : > { %p667_p6 = pnand %p666_p5, %p665_p3  ;;  %p671_p10 = scmp.lt.u32.totalorder %s669_s1, %s664_s17 }
  0x1d   : > { %p673_p12 = scmp.lt.u32.totalorder %s664_s17, %s882_s12 }
  0x1e   : > { %p668_p7 = pneg %p667_p6  ;;  %p672_p13 = por %p671_p10, %p670_p4 }
  0x20   : > { %p674_p1 = por %p673_p12, %p672_p13 }
  0x22   : > { %p675_p2 = pnand %p674_p1, %p668_p7 }
  0x24   : > { %678 = shalt.err (!%p675_p2)
}
  0x25   : > { %s679_s28 = scalar_lea.vmem %s884_s14, 128  ;;  %s778_s7 = smov [#allocation7]  }
  0x26   : > { %p680_p3 = scmp.ne.s32.totalorder %s884_s14, %s679_s28  ;;  %s684_s8 = sshll.u32 %s778_s7, 4  ;;  %s685_s8 = int_to_ptr.vmem [resolvable:$false] %s684_s8 }
  0x27   : > { %s686_s9 = scalar_lea.vmem %s685_s8, 256  ;;  %p687_p9 = scmp.lt.s32.totalorder %s884_s14, %s685_s8 }
  0x28   : > { %p682_p6 = pnand %p680_p3, %p666_p5  ;;  %p688_p4 = scmp.lt.s32.totalorder %s686_s9, %s679_s28 }
  0x2a   : > { %p683_p11 = pneg %p682_p6  ;;  %p689_p10 = por %p688_p4, %p687_p9 }
  0x2c   : > { %p690_p12 = pnand %p689_p10, %p683_p11 }
  0x2e   : > { %693 = shalt.err (!%p690_p12)
}
  0x2f   : > { %600 = dma.hbm_to_vmem [thread:$0]  (!%p888_p0), %s882_s12, 128, %s884_s14, %s148_s16  }
  0x30   : > { %p1035_p1 = scmp.lt.s32.totalorder %s776_s24, 3  ;;  %p1036_p2 = scmp.ge.s32.totalorder %s776_s24, 1 }
  0x32   : > { %p182_p5 = pnand %p1036_p2, %p1035_p1 }
  0x33   : > { %s924_s10 = sand.u32 (!%p182_p5), 1, %s760_s20  }
  0x34   : > { %185 = sbr.rel (%p182_p5) target bundleno = 368 (0x170), region = 28  ;;  %s581_s11 = sshll.u32 (!%p182_p5), %s924_s10, 3 }
  0x35   : > { %s188_s13 = scalar_lea.sflag (!%p182_p5), [#allocation8], %s924_s10  ;;  %s191_s17 = scalar_lea.vmem (!%p182_p5), [#allocation7], %s581_s11 }
  0x3b   : > { %747 = dma.done.wait (%p860_p8), %s188_s13, 128  }
  0x3c   : > { %749 = vsyncadd (%p860_p8), %s188_s13, 4294967168  ;;  %p224_p9 = scmp.lt.s32.totalorder %s768_s22, 1  ;;  %v238_v0 = vlaneseq  ;;  %s246_s12 = sld [smem:[#allocation5]]  ;;  %v779_v2 = vmov 0.0   ;;  %vm259_vm1 = vcmask 1043456   ;;  %v244_v4 = vld [vmem:[%s191_s17] sm:$0xff] }
  0x3d   : > { %s253_s29 = sld [smem:[#allocation6]]  ;;  %v257_v6 = vcombine.high %v244_v4, %v244_v4  ;;  %v260_v7 = vsel %vm259_vm1, %v244_v4, -inf  ;;  %v780_v40 = vmov 1966171168   ;;  %vm415_vm7 = vcmask 1040384   ;;  %s585_s27 = sshll.u32 %s768_s22, 4 }
  0x3e   : > { %s225_s14 = scalar_select %p224_p9, %s768_s22, 1  ;;  %vm935_vm0 = vcmp.lt.s32.totalorder %v238_v0, 256  ;;  %v299_v3 = vshrl.u32 %v238_v0, 7  ;;  %v261_v8 = vrot.slane %v260_v7, 4  ;;  %v359_v41 = vunpack.c.l.s4 %v780_v40 }
  0x3f   : > { %242 = vst.msk [vmem:[#allocation2] sm:$0x3] %vm935_vm0, %v779_v2  ;;  %243 = vst.msk [vmem:[#allocation3] sm:$0x3] %vm935_vm0, %v779_v2  ;;  %v267_v9 = vsel %vm259_vm1, %v257_v6, -inf  ;;  %s219_s7 = scalar_lea.vmem [#allocation10], %s924_s10  ;;  %s975_s13 = scalar_lea.hbm %s1028_s4, %s585_s27 }
  0x40   : > { %s582_s15 = sshll.u32 %s225_s14, 1  ;;  %v949_v10 = vsub.s32 0, %v299_v3  ;;  %v951_v11 = vsub.s32 1, %v299_v3  ;;  %v262_v14 = vmax.f32 %v260_v7, %v261_v8  ;;  %v268_v15 = vrot.slane %v267_v9, 4  ;;  %s476_s8 = sshll.u32 %s219_s7, 4  ;;  %s977_s8 = int_to_ptr.vmem [resolvable:$true] %s476_s8 }
  0x41   : > { %s230_s0 = scalar_lea.vmem %s1027_s3, %s582_s15  ;;  %v360_v47 = vunpack.c.0.s8 %v359_v41  ;;  %s463_s17 = scalar_lea.sflag [#allocation9], %s924_s10 }
  0x42   : > { %v245_v5 = vld [vmem:[%s230_s0] sm:$0x3]  ;;  %p247_p8 = scmp.ne.s32.totalorder %s246_s12, 0  ;;  %v263_v16 = vrot.slane %v262_v14, 2  ;;  %v269_v17 = vmax.f32 %v267_v9, %v268_v15  ;;  %s694_s22 = scalar_lea.vmem %s977_s8, 16 }
  0x43   : > { %vm248_vm2 = vcmp.eq.s32.totalorder %v245_v5, 255  ;;  %v254_v13 = vstv %s253_s29  ;;  %v363_v50 = vsub.s32 %v360_v47, %v299_v3  ;;  %p695_p11 = scmp.ne.s32.totalorder %s977_s8, %s694_s22  ;;  %p1039_p0 = scmp.ne.s32.totalorder %s1032_s30, 0 }
  0x44   : > { %s249_s1 = scalar_select %p247_p8, 1, 0  ;;  %v264_v19 = vmax.f32 %v262_v14, %v263_v16  ;;  %v270_v20 = vrot.slane %v269_v17, 2 }
  0x45   : > { %p696_p7 = pnand %p695_p11, %p1039_p0  ;;  %s781_s12 = smov [#allocation10]  }
  0x46   : > { %v250_v12 = vstv %s249_s1  ;;  %v265_v23 = vrot.slane %v264_v19, 1  ;;  %v271_v24 = vmax.f32 %v269_v17, %v270_v20  ;;  %v379_v54 = vld [vmem:[#allocation3] sm:$0x3]  ;;  %s698_s14 = sshll.u32 %s781_s12, 4  ;;  %s699_s14 = int_to_ptr.vmem [resolvable:$false] %s698_s14 }
  0x47   : > { %vm251_vm3 = vcmp.eq.s32.totalorder %v250_v12, 1  ;;  %p697_p13 = pneg %p696_p7  ;;  %s700_s29 = scalar_lea.vmem %s699_s14, 32 }
  0x48   : > { %vm252_vm4 = vmand %vm251_vm3, %vm248_vm2  ;;  %v266_v26 = vmax.f32 %v264_v19, %v265_v23  ;;  %v272_v27 = vrot.slane %v271_v24, 1  ;;  %p701_p3 = scmp.lt.s32.totalorder %s977_s8, %s699_s14  ;;  %p702_p6 = scmp.lt.s32.totalorder %s700_s29, %s694_s22 }
  0x49   : > { %v255_v18 = vsel %vm252_vm4, %v254_v13, %v245_v5 }
  0x4a   : > { %v303_v21 = vrot.slane %v255_v18, %v949_v10  ;;  %v307_v22 = vrot.slane %v255_v18, %v951_v11  ;;  %v273_v32 = vmax.f32 %v271_v24, %v272_v27  ;;  %p703_p4 = por %p702_p6, %p701_p3 }
  0x4c   : > { %vm308_vm5 = vcmp.eq.s32.totalorder %v299_v3, %v303_v21  ;;  %vm309_vm6 = vcmp.eq.s32.totalorder %v299_v3, %v307_v22  ;;  %v276_v35 = vcombine.low %v266_v26, %v273_v32  ;;  %p704_p10 = pnand %p703_p4, %p697_p13 }
  0x4d   : > { %v583_v25 = vsel %vm308_vm5, 1.0, %v779_v2  ;;  %v584_v28 = vsel %vm309_vm6, 1.0, %v779_v2 }
  0x4e   : > { %v340_v29 = vsel %vm259_vm1, %v583_v25, 0.0  ;;  %v347_v31 = vsel %vm259_vm1, %v584_v28, 0.0  ;;  %v278_v38 = vsub.f32 %v244_v4, %v276_v35  ;;  %v316_v53 = vcombine.low %v583_v25, %v584_v28  ;;  %v354_v35 = vld [vmem:[#allocation2] sm:$0x3] }
  0x4f   : > { %v341_v30 = vrot.slane %v340_v29, 4  ;;  %v348_v33 = vrot.slane %v347_v31, 4 }
  0x50   : > { %v279_v43 = vmul.f32 1.442695, %v278_v38 }
  0x51   : > { %v342_v34 = vadd.f32 %v341_v30, %v340_v29  ;;  %v349_v36 = vadd.f32 %v348_v33, %v347_v31 }
  0x52   : > { %658 = vpow2.f32 %v279_v43 }
  0x53   : > { %v343_v37 = vrot.slane %v342_v34, 2  ;;  %v350_v39 = vrot.slane %v349_v36, 2 }
  0x55   : > { %v344_v42 = vadd.f32 %v343_v37, %v342_v34  ;;  %v351_v44 = vadd.f32 %v350_v39, %v349_v36 }
  0x57   : > { %v345_v45 = vrot.slane %v344_v42, 1  ;;  %v352_v46 = vrot.slane %v351_v44, 1 }
  0x59   : > { %v346_v48 = vadd.f32 %v345_v45, %v344_v42  ;;  %v353_v49 = vadd.f32 %v352_v46, %v351_v44 }
  0x5b   : > { %v382_v51 = vcombine.low %v346_v48, %v353_v49 }
  0x5c   : > { %v659_v56 = vpop.eup %658 }
  0x5d   : > { %v389_v52 = vrot.slane %v382_v51, %v363_v50  ;;  %v282_v58 = vcombine.high %v659_v56, %v659_v56  ;;  %v284_v59 = vsel %vm259_vm1, %v659_v56, 0.0  ;;  %v318_v60 = vmul.f32 %v659_v56, %v316_v53 }
  0x5e   : > { %v285_v61 = vrot.slane %v284_v59, 4 }
  0x5f   : > { %v396_v55 = vrot.slane %v389_v52, %v363_v50  ;;  %v291_v62 = vsel %vm259_vm1, %v282_v58, 0.0  ;;  %v320_v63 = vcombine.high %v318_v60, %v318_v60  ;;  %v322_v2 = vsel %vm259_vm1, %v318_v60, 0.0 }
  0x60   : > { %v286_v3 = vadd.f32 %v285_v61, %v284_v59  ;;  %v292_v4 = vrot.slane %v291_v62, 4  ;;  %v323_v5 = vrot.slane %v322_v2, 4  ;;  %v453_v61 = vand.u32 127, %v238_v0 }
  0x61   : > { %v398_v57 = vadd.f32 %v396_v55, %v379_v54  ;;  %v329_v6 = vsel %vm259_vm1, %v320_v63, 0.0 }
  0x62   : > { %v287_v7 = vrot.slane %v286_v3, 2  ;;  %v293_v8 = vadd.f32 %v292_v4, %v291_v62  ;;  %v324_v9 = vadd.f32 %v323_v5, %v322_v2  ;;  %v330_v12 = vrot.slane %v329_v6, 4 }
  0x63   : > { %399 = vst.msk [vmem:[#allocation3] sm:$0x3] %vm935_vm0, %v398_v57  ;;  %vm454_vm8 = vcmp.eq.s32.totalorder %v453_v61, 0  ;;  %vm457_vm9 = vcmp.eq.s32.totalorder %v453_v61, 1 }
  0x64   : > { %v288_v13 = vadd.f32 %v287_v7, %v286_v3  ;;  %v294_v14 = vrot.slane %v293_v8, 2  ;;  %v331_v15 = vadd.f32 %v330_v12, %v329_v6  ;;  %v325_v16 = vrot.slane %v324_v9, 2 }
  0x66   : > { %v289_v17 = vrot.slane %v288_v13, 1  ;;  %v295_v18 = vadd.f32 %v294_v14, %v293_v8  ;;  %v332_v19 = vrot.slane %v331_v15, 2  ;;  %v326_v22 = vadd.f32 %v325_v16, %v324_v9 }
  0x68   : > { %v290_v20 = vadd.f32 %v289_v17, %v288_v13  ;;  %v296_v21 = vrot.slane %v295_v18, 1  ;;  %v333_v24 = vadd.f32 %v332_v19, %v331_v15  ;;  %v327_v25 = vrot.slane %v326_v22, 1 }
  0x6a   : > { %v297_v23 = vadd.f32 %v296_v21, %v295_v18  ;;  %660 = vrcp.f32 %v290_v20  ;;  %v334_v26 = vrot.slane %v333_v24, 1  ;;  %v328_v27 = vadd.f32 %v327_v25, %v326_v22  ;;  %v428_v38 = vld [vmem:[#allocation3] sm:$0x3] }
  0x6b   : > { %v433_v39 = vrot.slane %v428_v38, %v949_v10  ;;  %v437_v40 = vrot.slane %v428_v38, %v951_v11 }
  0x6c   : > { %662 = vrcp.f32 %v297_v23  ;;  %v335_v28 = vadd.f32 %v334_v26, %v333_v24 }
  0x6d   : > { %v440_v46 = vsel %vm415_vm7, %v433_v39, 0.0  ;;  %v441_v47 = vsel %vm415_vm7, %v437_v40, 0.0 }
  0x6e   : > { %v442_v49 = vadd.f32 %v441_v47, %v440_v46 }
  0x74   : > { %v661_v29 = vpop.eup %660 }
  0x75   : > { %v337_v30 = vmul.f32 %v661_v29, %v328_v27 }
  0x76   : > { %v663_v31 = vpop.eup %662 }
  0x77   : > { %v339_v32 = vmul.f32 %v663_v31, %v335_v28 }
  0x79   : > { %v357_v33 = vcombine.low %v337_v30, %v339_v32 }
  0x7b   : > { %v364_v34 = vrot.slane %v357_v33, %v363_v50 }
  0x7d   : > { %v371_v36 = vrot.slane %v364_v34, %v363_v50 }
  0x7f   : > { %v373_v37 = vadd.f32 %v371_v36, %v354_v35 }
  0x81   : > { %378 = vst.msk [vmem:[#allocation2] sm:$0x3] %vm935_vm0, %v373_v37 }
  0x88   : > { %v403_v41 = vld [vmem:[#allocation2] sm:$0x3] }
  0x89   : > { %v408_v42 = vrot.slane %v403_v41, %v949_v10  ;;  %v412_v43 = vrot.slane %v403_v41, %v951_v11 }
  0x8b   : > { %v416_v44 = vsel %vm415_vm7, %v408_v42, 0.0  ;;  %v417_v45 = vsel %vm415_vm7, %v412_v43, 0.0 }
  0x8c   : > { %v418_v48 = vadd.f32 %v417_v45, %v416_v44 }
  0x8e   : > { %419 = vadd.xlane.f32.xlu0 %v418_v48 }
  0x92   : > { %443 = vadd.xlane.f32.xlu0 %v442_v49 }
 0x11b   : > { %v420_v1 = vpop.xlane.xlu0 %419 }
 0x11c   : > { %v421_v50 = vrot.slane %v420_v1, 4 }
 0x11e   : > { %v422_v51 = vadd.f32 %v421_v50, %v420_v1 }
 0x11f   : > { %v444_v52 = vpop.xlane.xlu0 %443 }
 0x120   : > { %v423_v53 = vrot.slane %v422_v51, 2  ;;  %v445_v54 = vrot.slane %v444_v52, 4 }
 0x122   : > { %v446_v55 = vadd.f32 %v445_v54, %v444_v52  ;;  %v424_v56 = vadd.f32 %v423_v53, %v422_v51 }
 0x124   : > { %v447_v10 = vrot.slane %v446_v55, 2  ;;  %v425_v11 = vrot.slane %v424_v56, 1 }
 0x126   : > { %v448_v57 = vadd.f32 %v447_v10, %v446_v55  ;;  %v426_v58 = vadd.f32 %v425_v11, %v424_v56 }
 0x128   : > { %589 = vpush %v426_v58  ;;  %v449_v59 = vrot.slane %v448_v57, 1 }
 0x12a   : > { %v450_v60 = vadd.f32 %v449_v59, %v448_v57 }
 0x12c   : > { %591 = vpush %v450_v60 }
 0x159   : > { %s590_s26 = spop %589 }
 0x15a   : > { %v455_v62 = vstv %s590_s26 }
 0x15b   : > { %v456_v2 = vsel %vm454_vm8, %v455_v62, 0.0 }
 0x15d   : > { %s592_s28 = spop %591 }
 0x15e   : > { %v458_v63 = vstv %s592_s28 }
 0x15f   : > { %v459_v3 = vsel %vm457_vm9, %v458_v63, 0.0 }
 0x160   : > { %v460_v4 = vadd.f32 %v459_v3, %v456_v2 }
 0x162   : > { %461 = vst [vmem:[%s219_s7] sm:$0x1] %v460_v4 }
 0x163   : > { %707 = shalt.err (!%p704_p10)
}
 0x164   : > { %s708_s10 = scalar_lea.hbm %s975_s13, 16  ;;  %s712_s18 = scalar_lea.hbm %s1028_s4, 32 }
 0x165   : > { %p709_p12 = scmp.ne.s32.totalorder %s975_s13, %s708_s10  ;;  %p713_p5 = scmp.lt.u32.totalorder %s975_s13, %s1028_s4 }
 0x166   : > { %p714_p9 = scmp.lt.u32.totalorder %s712_s18, %s708_s10  ;;  %p716_p11 = scmp.lt.u32.totalorder %s708_s10, %s975_s13 }
 0x167   : > { %p710_p1 = pnand %p709_p12, %p1039_p0 }
 0x168   : > { %p715_p8 = por %p714_p9, %p713_p5 }
 0x169   : > { %p711_p2 = pneg %p710_p1 }
 0x16a   : > { %p717_p7 = por %p716_p11, %p715_p8 }
 0x16c   : > { %p718_p13 = pnand %p717_p7, %p711_p2 }
 0x16e   : > { %721 = shalt.err (!%p718_p13)
}
 0x16f   : > { %595 = dma.vmem_to_hbm [thread:$0]  (%p1039_p0), %s977_s8, 16, %s975_s13, %s463_s17  }
 0x170 PF: > { %s488_s26 = sand.u32 1, %s756_s19   ;;  %p1040_p3 = scmp.ne.s32.totalorder %s1033_s6, 0 }
 0x171   : > { %p1041_p6 = scmp.ge.s32.totalorder %s776_s24, 2  ;;  %s489_s27 = scalar_lea.sflag [#allocation9], %s488_s26 }
 0x173   : > { %p602_p4 = pnand %p1041_p6, %p1040_p3 }
 0x175   : > { %751 = dma.done.wait (!%p602_p4), %s489_s27, 16  }
 0x176   : > { %753 = vsyncadd (!%p602_p4), %s489_s27, 4294967280  ;;  %s22_s24 = sadd.s32 1, %s776_s24   ;;  %s1042_s19 = smov %s760_s20 }
 0x177   : > { %p19_p10 = scmp.ge.s32.totalorder %s22_s24, 4   ;;  %s1043_s20 = smov %s764_s21 }
 0x178   : > { %s1044_s21 = smov %s869_s5  ;;  %s1045_s22 = smov %s772_s23 }
 0x179   : > { %s1046_s23 = smov %s1048_s25  ;;  %21 = sbr.rel (!%p19_p10) target bundleno = 9 (0x9), region = 84 }
 0x180   :  { %493 = vsyncpa [#allocation8], 1 }
 0x181   :  { %495 = vsyncpa [#allocation8 + $0x1], 1 }
 0x182   :  { %496 = vsyncpa [#allocation9], 1 }
 0x183   :  { %498 = vsyncpa [#allocation9 + $0x1], 1 }

</bundles_post_ra>
